<compile_context>
chip_gen: v5e
topology: v5e:2x2
jax: 0.10.0
libtpu: 0.0.40
codegen_flags: <defaults>
</compile_context>

<pallas_src>
import functools

import jax
import jax.numpy as jnp
from jax.experimental import pallas as pl
from jax.experimental.pallas import tpu as pltpu

_LANE = 128
_MAX_TILE = 2048  # pixels per grid step once the problem outgrows one tile


# ---------------------------------------------------------------------------
# Pallas kernel: the whole network on a (channels, pixel-tile) block
# ---------------------------------------------------------------------------
def _fused_kernel(x_ref, wa_ref, ba_ref, wb_ref, bb_ref, o_ref):
    # x_ref : (Cin, TN)    pixels on the 128-lane axis
    # wa_ref: (H, Cin)     folded conv1..conv5 (transposed), ba_ref: (H, 1)
    # wb_ref: (Ncls, H)    folded conv6+linear (transposed), bb_ref: (Ncls, 1)
    # o_ref : (Ncls, TN)   per-pixel log-softmax
    h = jnp.dot(wa_ref[...], x_ref[...],
                preferred_element_type=jnp.float32) + ba_ref[...]
    t = jnp.tanh(h)
    logits = jnp.dot(wb_ref[...], t,
                     preferred_element_type=jnp.float32) + bb_ref[...]
    m = jnp.max(logits, axis=0, keepdims=True)          # sublane reduce (10)
    z = logits - m
    lse = jnp.log(jnp.sum(jnp.exp(z), axis=0, keepdims=True))
    o_ref[...] = (z - lse).astype(o_ref.dtype)


def _pixel_tile(p):
    """Lane tile (multiple of 128) and padded pixel count; no row waste beyond
    lane alignment."""
    p_pad = ((p + _LANE - 1) // _LANE) * _LANE
    if p_pad <= _MAX_TILE:
        return p_pad, p_pad           # single grid step (whole thing in VMEM)
    tn = _MAX_TILE
    return tn, ((p + tn - 1) // tn) * tn


# ---------------------------------------------------------------------------
# Ring constants: padded pixels depend only on the biases (per-layer sequence)
# ---------------------------------------------------------------------------
def _ring_constants(params, mm):
    ws = [params["w%d" % i] for i in range(1, 7)]
    bs = [params["b%d" % i] for i in range(1, 7)]
    consts = []
    for k in range(1, 7):                 # ring added by conv_k's padding
        v = bs[k - 1]                     # conv_k output at zero input
        for j in range(k, 5):             # conv_{k+1} .. conv_5
            v = mm(v, ws[j]) + bs[j]
        if k <= 5:                        # tanh sits between conv5 and conv6
            v = mm(jnp.tanh(v), ws[5]) + bs[5]
        v = mm(v, params["wl"]) + params["bl"]
        consts.append(jax.nn.log_softmax(v))   # (10,)
    return consts                          # inside-out: conv1 ring first


# ---------------------------------------------------------------------------
# Forward pass
# ---------------------------------------------------------------------------
def model_tanh_forward(x_nchw, params):
    n, cin, h, w = x_nchw.shape
    mm = functools.partial(jnp.matmul, precision=jax.lax.Precision.HIGHEST)

    w1, w2, w3, w4, w5 = (params["w%d" % i] for i in range(1, 6))
    b1, b2, b3, b4, b5 = (params["b%d" % i] for i in range(1, 6))
    w6, b6, wl, bl = params["w6"], params["b6"], params["wl"], params["bl"]
    nclass = wl.shape[1]

    # Algebraic collapse (tiny, done once at full precision in the wrapper).
    w_a = mm(mm(mm(mm(w1, w2), w3), w4), w5)                       # (16, 16)
    b_a = mm(mm(mm(mm(b1, w2) + b2, w3) + b3, w4) + b4, w5) + b5   # (16,)
    w_b = mm(w6, wl)                                               # (16, 10)
    b_b = mm(b6, wl) + bl                                          # (10,)
    hid = w_a.shape[1]

    # Data region only, pixels-on-lanes layout: (Cin, N*H*W).
    p = n * h * w
    x_cp = x_nchw.reshape(n, cin, h * w).transpose(1, 0, 2).reshape(cin, p)
    tn, p_pad = _pixel_tile(p)
    x_cp = jnp.pad(x_cp, ((0, 0), (0, p_pad - p)))

    # Single fused pallas_call.  For this problem size one grid step suffices;
    # larger pixel counts tile along lanes ("parallel" -> megacore on v7x).
    out_cp = pl.pallas_call(
        _fused_kernel,
        out_shape=jax.ShapeDtypeStruct((nclass, p_pad), jnp.float32),
        grid=(p_pad // tn,),
        in_specs=[
            pl.BlockSpec((cin, tn), lambda i: (0, i)),
            pl.BlockSpec((hid, cin), lambda i: (0, 0)),
            pl.BlockSpec((hid, 1), lambda i: (0, 0)),
            pl.BlockSpec((nclass, hid), lambda i: (0, 0)),
            pl.BlockSpec((nclass, 1), lambda i: (0, 0)),
        ],
        out_specs=pl.BlockSpec((nclass, tn), lambda i: (0, i)),
        compiler_params=pltpu.CompilerParams(dimension_semantics=("parallel",)),
    )(x_cp, w_a.T, b_a.reshape(hid, 1), w_b.T, b_b.reshape(nclass, 1))

    y = out_cp[:, :p].reshape(nclass, n, h, w).transpose(1, 0, 2, 3)  # NCHW

    # Fill the six constant 2-pixel rings from the inside out (wrapper glue).
    for const in _ring_constants(params, mm):
        hh, ww = y.shape[2] + 4, y.shape[3] + 4
        canvas = jnp.broadcast_to(const[None, :, None, None], (n, nclass, hh, ww))
        y = canvas.at[:, :, 2:-2, 2:-2].set(y)
    return y


# ---------------------------------------------------------------------------
# Deterministic parameter init (PyTorch-style uniform(-1/sqrt(fan_in), ...))
# ---------------------------------------------------------------------------
def init_params(key):
    def _layer(k, cin, cout):
        k1, k2 = jax.random.split(k)
        bound = 1.0 / (cin ** 0.5)
        w = jax.random.uniform(k1, (cin, cout), jnp.float32, -bound, bound)
        b = jax.random.uniform(k2, (cout,), jnp.float32, -bound, bound)
        return w, b

    keys = jax.random.split(key, 7)
    dims = [(16, 10), (10, 16), (16, 10), (10, 4), (4, 16), (16, 16), (16, 10)]
    names = ["1", "2", "3", "4", "5", "6", "l"]
    params = {}
    for k, (cin, cout), nm in zip(keys, dims, names):
        w, b = _layer(k, cin, cout)
        params["w" + nm] = w
        params["b" + nm] = b
    return params


# ---------------------------------------------------------------------------
# Pure-JAX per-layer reference (same adapted semantics) for correctness check
# ---------------------------------------------------------------------------
def ref_forward(x_nchw, params):
    hp = jax.lax.Precision.HIGHEST
    x = jnp.transpose(x_nchw, (0, 2, 3, 1))

    def conv(x, w, b, act=None):
        x = jnp.pad(x, ((0, 0), (2, 2), (2, 2), (0, 0)))
        y = jnp.einsum("nhwc,cd->nhwd", x, w, precision=hp) + b
        return jnp.tanh(y) if act == "tanh" else y

    x = conv(x, params["w1"], params["b1"])
    x = conv(x, params["w2"], params["b2"])
    x = conv(x, params["w3"], params["b3"])
    x = conv(x, params["w4"], params["b4"])
    x = conv(x, params["w5"], params["b5"], act="tanh")
    x = conv(x, params["w6"], params["b6"])
    y = jnp.einsum("nhwc,cd->nhwd", x, params["wl"], precision=hp) + params["bl"]
    y = jax.nn.log_softmax(y, axis=-1)
    return jnp.transpose(y, (0, 3, 1, 2))


if __name__ == "__main__":
    key = jax.random.PRNGKey(0)
    kp, kx = jax.random.split(key)
    params = init_params(kp)
    # small input: batch=2, channels=16 (conv1 expects 16), spatial=8x8
    x = jax.random.normal(kx, (2, 16, 8, 8), dtype=jnp.float32)

    out = jax.block_until_ready(jax.jit(model_tanh_forward)(x, params))
    ref = jax.block_until_ready(ref_forward(x, params))

    assert out.shape == (2, 10, 32, 32), out.shape
    err = float(jnp.max(jnp.abs(out - ref)))
    # Folded weights change f32 summation order slightly vs the per-layer
    # reference; 1e-4 on log-probabilities is still a strict check.
    assert err < 1e-4, err
    print("KERNEL_OK")
</pallas_src>

<mosaic_0001>
module attributes {stable_mosaic.version = 11 : i64} {
  func.func @_fused_kernel(%arg0: i32, %arg1: memref<16x128xf32, #tpu.memory_space<vmem>>, %arg2: memref<16x16xf32, #tpu.memory_space<vmem>>, %arg3: memref<16x1xf32, #tpu.memory_space<vmem>>, %arg4: memref<10x16xf32, #tpu.memory_space<vmem>>, %arg5: memref<10x1xf32, #tpu.memory_space<vmem>>, %arg6: memref<10x128xf32, #tpu.memory_space<vmem>>) attributes {dimension_semantics = [#tpu.dimension_semantics<parallel>], iteration_bounds = array<i64: 1>, scalar_prefetch = 0 : i64, scratch_operands = 0 : i64, tpu.core_type = #tpu.core_type<tc>, window_params = [{transform_indices = @transform_0, window_bounds = array<i64: 16, 128>}, {pipeline_mode = #tpu.pipeline_mode<synchronous>, transform_indices = @transform_1, window_bounds = array<i64: 16, 16>}, {pipeline_mode = #tpu.pipeline_mode<synchronous>, transform_indices = @transform_2, window_bounds = array<i64: 16, 1>}, {pipeline_mode = #tpu.pipeline_mode<synchronous>, transform_indices = @transform_3, window_bounds = array<i64: 10, 16>}, {pipeline_mode = #tpu.pipeline_mode<synchronous>, transform_indices = @transform_4, window_bounds = array<i64: 10, 1>}, {transform_indices = @transform_5, window_bounds = array<i64: 10, 128>}]} {
    %c0 = arith.constant 0 : index
    %c0_0 = arith.constant 0 : index
    %0 = vector.load %arg2[%c0, %c0_0] : memref<16x16xf32, #tpu.memory_space<vmem>>, vector<16x16xf32>
    %c0_1 = arith.constant 0 : index
    %c0_2 = arith.constant 0 : index
    %1 = vector.load %arg1[%c0_1, %c0_2] : memref<16x128xf32, #tpu.memory_space<vmem>>, vector<16x128xf32>
    %cst = arith.constant dense<0.000000e+00> : vector<16x128xf32>
    %2 = tpu.matmul %0, %1, %cst {dimension_numbers = #tpu.dot_dimension_numbers<[1], [0], [0], [1], [0, 0, 1, 1], [], []>} : vector<16x16xf32>, vector<16x128xf32>, vector<16x128xf32> -> vector<16x128xf32>
    %c0_3 = arith.constant 0 : index
    %c0_4 = arith.constant 0 : index
    %3 = vector.load %arg3[%c0_3, %c0_4] : memref<16x1xf32, #tpu.memory_space<vmem>>, vector<16x1xf32>
    %4 = vector.broadcast %3 : vector<16x1xf32> to vector<16x128xf32>
    %5 = arith.addf %2, %4 : vector<16x128xf32>
    %6 = math.tanh %5 : vector<16x128xf32>
    %c0_5 = arith.constant 0 : index
    %c0_6 = arith.constant 0 : index
    %7 = vector.load %arg4[%c0_5, %c0_6] : memref<10x16xf32, #tpu.memory_space<vmem>>, vector<10x16xf32>
    %cst_7 = arith.constant dense<0.000000e+00> : vector<10x128xf32>
    %8 = tpu.matmul %7, %6, %cst_7 {dimension_numbers = #tpu.dot_dimension_numbers<[1], [0], [0], [1], [0, 0, 1, 1], [], []>} : vector<10x16xf32>, vector<16x128xf32>, vector<10x128xf32> -> vector<10x128xf32>
    %c0_8 = arith.constant 0 : index
    %c0_9 = arith.constant 0 : index
    %9 = vector.load %arg5[%c0_8, %c0_9] : memref<10x1xf32, #tpu.memory_space<vmem>>, vector<10x1xf32>
    %10 = vector.broadcast %9 : vector<10x1xf32> to vector<10x128xf32>
    %11 = arith.addf %8, %10 : vector<10x128xf32>
    %cst_10 = arith.constant dense<0xFF800000> : vector<128xf32>
    %12 = vector.multi_reduction <maximumf>, %11, %cst_10 [0] : vector<10x128xf32> to vector<128xf32>
    %13 = vector.shape_cast %12 : vector<128xf32> to vector<1x128xf32>
    %14 = vector.broadcast %13 : vector<1x128xf32> to vector<10x128xf32>
    %15 = arith.subf %11, %14 : vector<10x128xf32>
    %16 = math.exp %15 : vector<10x128xf32>
    %cst_11 = arith.constant dense<0.000000e+00> : vector<128xf32>
    %17 = vector.multi_reduction <add>, %16, %cst_11 [0] : vector<10x128xf32> to vector<128xf32>
    %18 = vector.shape_cast %17 : vector<128xf32> to vector<1x128xf32>
    %19 = math.log %18 : vector<1x128xf32>
    %20 = vector.broadcast %19 : vector<1x128xf32> to vector<10x128xf32>
    %21 = arith.subf %15, %20 : vector<10x128xf32>
    %c0_12 = arith.constant 0 : index
    %c0_13 = arith.constant 0 : index
    %22 = vector.load %arg6[%c0_12, %c0_13] : memref<10x128xf32, #tpu.memory_space<vmem>>, vector<10x128xf32>
    tpu.vector_store %arg6[%c0_12, %c0_13], %21 {strides = array<i32>} : memref<10x128xf32, #tpu.memory_space<vmem>>, vector<10x128xf32>,
    return
  }
  func.func @transform_0(%arg0: i32) -> (i32, i32) {
    %c0_i32 = arith.constant 0 : i32
    %c0_i32_0 = arith.constant 0 : i32
    return %c0_i32, %arg0 : i32, i32
  }
  func.func @transform_1(%arg0: i32) -> (i32, i32) {
    %c0_i32 = arith.constant 0 : i32
    %c0_i32_0 = arith.constant 0 : i32
    %c0_i32_1 = arith.constant 0 : i32
    return %c0_i32, %c0_i32_0 : i32, i32
  }
  func.func @transform_2(%arg0: i32) -> (i32, i32) {
    %c0_i32 = arith.constant 0 : i32
    %c0_i32_0 = arith.constant 0 : i32
    %c0_i32_1 = arith.constant 0 : i32
    return %c0_i32, %c0_i32_0 : i32, i32
  }
  func.func @transform_3(%arg0: i32) -> (i32, i32) {
    %c0_i32 = arith.constant 0 : i32
    %c0_i32_0 = arith.constant 0 : i32
    %c0_i32_1 = arith.constant 0 : i32
    return %c0_i32, %c0_i32_0 : i32, i32
  }
  func.func @transform_4(%arg0: i32) -> (i32, i32) {
    %c0_i32 = arith.constant 0 : i32
    %c0_i32_0 = arith.constant 0 : i32
    %c0_i32_1 = arith.constant 0 : i32
    return %c0_i32, %c0_i32_0 : i32, i32
  }
  func.func @transform_5(%arg0: i32) -> (i32, i32) {
    %c0_i32 = arith.constant 0 : i32
    %c0_i32_0 = arith.constant 0 : i32
    return %c0_i32, %arg0 : i32, i32
  }
}

</mosaic_0001>

<bundles_post_ra>
// kernel: model_tanh_forward.1
= control target key start
LH: loop header
LB: loop body
LE: loop exit
PB: predicated region body
PF: predicated region fallthrough
CT: control target
= control target key end

     0   :  { %v165_v2 = vmov 0   ;;  %vm36_vm0 = vcmask 130048   ;;  %vm111_vm1 = vcmask 1041408   ;;  %s238_s0 = inlined_call_operand.vmem [shape: f32[16,128], index: 0, kind: input, shape index: {}]   ;;  %s239_s1 = inlined_call_operand.vmem [shape: f32[16,16], index: 1, kind: input, shape index: {}]   ;;  %s240_s2 = inlined_call_operand.vmem [shape: f32[16,1], index: 2, kind: input, shape index: {}]   ;;  %s241_s4 = inlined_call_operand.vmem [shape: f32[10,1], index: 4, kind: input, shape index: {}]   ;;  %s242_s3 = inlined_call_operand.vmem [shape: f32[10,16], index: 3, kind: input, shape index: {}]   ;;  %s243_s5 = inlined_call_operand.vmem [shape: f32[10,128], index: 5, kind: output, shape index: {}]  }
   0x1   :  { %v23_v0 = vld [vmem:[%s238_s0 + $0x8] sm:$0xff]  ;;  %v22_v1 = vld [vmem:[%s238_s0] sm:$0xff]  ;;  %153 = vset.pattern.permute.xlu0 %v165_v2  ;;  %154 = vset.pattern.permute.xlu1 %v165_v2 }
   0x2   :  { %57 = vmatpush.msra.mxu0 %v23_v0  ;;  %148 = vmatpush.msra.mxu2 %v23_v0  ;;  %v20_v3 = vld [vmem:[%s239_s1] sm:$0xff]  ;;  %v21_v4 = vld [vmem:[%s239_s1 + $0x8] sm:$0xff] }
   0x3   :  { %v25_v5 = vld [vmem:[%s240_s2 + $0x8] sm:$0xff]  ;;  %v24_v6 = vld [vmem:[%s240_s2] sm:$0xff] }
   0x4   :  { %33 = vperm.xlu0 %153, %v25_v5   ;;  %58 = vmatpush.msra.mxu0 %v22_v1  ;;  %v71_v7 = vld [vmem:[%s241_s4 + $0x8] sm:$0x3]  ;;  %v70_v8 = vld [vmem:[%s241_s4] sm:$0xff] }
   0x5   :  { %149 = vmatpush.msra.mxu2 %v22_v1  ;;  %144 = vmatmul.msk.f32.vlgmr.msra.gmra.mxu0 %vm36_vm0, %v20_v3  ;;  %v68_v16 = vld [vmem:[%s242_s3] sm:$0xff]  ;;  %v69_v17 = vld [vmem:[%s242_s3 + $0x8] sm:$0x3] }
   0x6   :  { %145 = vmatmul.msk.f32.vlgmr.msra.gmra.mxu2 %vm36_vm0, %v21_v4  ;;  %79 = vperm.xlu1 %154, %v71_v7  }
   0xc   :  { %28 = vperm.xlu0 %153, %v24_v6  }
   0xe   :  { %74 = vperm.xlu1 %154, %v70_v8  }
  0x76   :  { %v34_v9 = vpop.permute.xlu0 %33 }
  0x78   :  { %v80_v19 = vpop.permute.xlu1 %79 }
  0x7e   :  { %v29_v10 = vpop.permute.xlu0 %28 }
  0x80   :  { %v75_v20 = vpop.permute.xlu1 %74 }
  0x82   :  { %v60_v11 = vpop.f32.mrf.mxu0 }
  0x83   :  { %v61_v13 = vadd.f32 %v60_v11, %v29_v10 }
  0x89   :  { %v63_v12 = vpop.f32.mrf.mxu2 }
  0x8a   :  { %v64_v14 = vadd.f32 %v63_v12, %v34_v9 }
  0x8c   :  { %155 = vtanh.f32 %v64_v14 }
  0x8d   :  { %157 = vtanh.f32 %v61_v13 }
  0x92   :  { %v156_v15 = vpop.eup %155 }
  0x93   :  { %102 = vmatpush.msra.mxu1 %v156_v15  ;;  %150 = vmatpush.msra.mxu3 %v156_v15  ;;  %v158_v18 = vpop.eup %157 }
  0x95   :  { %103 = vmatpush.msra.mxu1 %v158_v18  ;;  %151 = vmatpush.msra.mxu3 %v158_v18 }
  0x96   :  { %146 = vmatmul.msk.f32.vlgmr.msra.gmra.mxu1 %vm36_vm0, %v68_v16  ;;  %147 = vmatmul.msk.f32.vlgmr.msra.gmra.mxu3 %vm36_vm0, %v69_v17 }
 0x113   :  { %v105_v21 = vpop.f32.mrf.mxu1 }
 0x114   :  { %v106_v24 = vadd.f32 %v105_v21, %v75_v20 }
 0x119   :  { %v108_v22 = vpop.f32.mrf.mxu3 }
 0x11a   :  { %v109_v23 = vadd.f32 %v108_v22, %v80_v19 }
 0x11c   :  { %v112_v25 = vsel %vm111_vm1, %v109_v23, -inf }
 0x11d   :  { %v113_v26 = vmax.f32 %v106_v24, %v112_v25 }
 0x11f   :  { %v114_v27 = vrot.slane %v113_v26, 4 }
 0x121   :  { %v115_v28 = vmax.f32 %v113_v26, %v114_v27 }
 0x123   :  { %v116_v29 = vrot.slane %v115_v28, 2 }
 0x125   :  { %v117_v30 = vmax.f32 %v115_v28, %v116_v29 }
 0x127   :  { %v118_v31 = vrot.slane %v117_v30, 1 }
 0x129   :  { %v119_v32 = vmax.f32 %v117_v30, %v118_v31 }
 0x12b   :  { %v120_v33 = vsub.f32 %v106_v24, %v119_v32  ;;  %v121_v34 = vsub.f32 %v109_v23, %v119_v32 }
 0x12d   :  { %v122_v35 = vmul.f32 1.442695, %v120_v33  ;;  %v124_v36 = vmul.f32 1.442695, %v121_v34 }
 0x12f   :  { %159 = vpow2.f32 %v122_v35 }
 0x130   :  { %161 = vpow2.f32 %v124_v36 }
 0x135   :  { %v160_v37 = vpop.eup %159 }
 0x136   :  { %v162_v38 = vpop.eup %161 }
 0x137   :  { %v126_v39 = vsel %vm111_vm1, %v162_v38, 0.0 }
 0x138   :  { %v127_v40 = vadd.f32 %v160_v37, %v126_v39 }
 0x13a   :  { %v128_v41 = vrot.slane %v127_v40, 4 }
 0x13c   :  { %v129_v42 = vadd.f32 %v128_v41, %v127_v40 }
 0x13e   :  { %v130_v43 = vrot.slane %v129_v42, 2 }
 0x140   :  { %v131_v44 = vadd.f32 %v130_v43, %v129_v42 }
 0x142   :  { %v132_v45 = vrot.slane %v131_v44, 1 }
 0x144   :  { %v133_v46 = vadd.f32 %v132_v45, %v131_v44 }
 0x146   :  { %163 = vlog2.f32 %v133_v46 }
 0x14c   :  { %v164_v47 = vpop.eup %163 }
 0x14d   :  { %v135_v48 = vmul.f32 0.6931472, %v164_v47 }
 0x14f   :  { %v136_v49 = vsub.f32 %v120_v33, %v135_v48  ;;  %v137_v50 = vsub.f32 %v121_v34, %v135_v48 }
 0x151   :  { %138 = vst [vmem:[%s243_s5] sm:$0xff] %v136_v49 }
 0x152   :  { %139 = vst [vmem:[%s243_s5 + $0x8] sm:$0x3] %v137_v50 }

</bundles_post_ra>
